<compile_context>
chip_gen: v5e
topology: v5e:2x2
jax: 0.10.0
libtpu: 0.0.40
codegen_flags: <defaults>
</compile_context>

<pallas_src>
import functools
import numpy as np
import jax
import jax.numpy as jnp
from jax.experimental import pallas as pl
from jax.experimental.pallas import tpu as pltpu


# ------------------------------ tiling helpers --------------------------------

def _tile(dim, target, mult):
    """Largest tile <= target that divides dim and is a multiple of `mult`;
    falls back to the full dim (full-extent blocks are always legal).
    TODO(synk): pad+mask awkward (prime-ish) dims instead of the full-dim
    fallback so huge dims cannot silently blow VMEM on v7x."""
    if dim <= target:
        return dim
    t = (target // mult) * mult
    while t >= mult:
        if dim % t == 0:
            return t
        t -= mult
    return dim


# ----------------------------- Pallas kernels ---------------------------------

def _matmul_kernel_single(x_ref, w_ref, b_ref, o_ref, *, act):
    # Single K step: no scratch accumulator needed at all.
    y = jnp.dot(x_ref[...], w_ref[...], preferred_element_type=jnp.float32)
    y = y + b_ref[...].astype(jnp.float32)
    if act == "relu":
        y = jnp.maximum(y, 0.0)
    o_ref[...] = y.astype(o_ref.dtype)


def _matmul_kernel_acc(x_ref, w_ref, b_ref, o_ref, acc_ref, *, act):
    # Tiled matmul, K-reduction axis last ("arbitrary").  The output is bf16, so
    # partial sums live in an f32 VMEM scratch; bias + activation fused into the
    # finalize step.
    @pl.when(pl.program_id(2) == 0)
    def _():
        acc_ref[...] = jnp.zeros_like(acc_ref)

    acc_ref[...] += jnp.dot(x_ref[...], w_ref[...],
                            preferred_element_type=jnp.float32)

    @pl.when(pl.program_id(2) == pl.num_programs(2) - 1)
    def _():
        y = acc_ref[...] + b_ref[...].astype(jnp.float32)
        if act == "relu":
            y = jnp.maximum(y, 0.0)
        o_ref[...] = y.astype(o_ref.dtype)


def pallas_linear(x2d, w, b, act=None, out_dtype=jnp.bfloat16,
                  *, tm=256, tn=512, tk=512):
    # x2d: (M, K) bf16, w: (K, N) bf16, b: (N,) f32 -> (M, N) out_dtype
    if x2d.dtype != jnp.bfloat16:
        x2d = x2d.astype(jnp.bfloat16)
    M, K = x2d.shape
    N = w.shape[1]
    bm = _tile(M, tm, 8)
    bn = _tile(N, tn, 128)
    bk = _tile(K, tk, 128)
    nk = K // bk
    b2 = b.reshape(1, N).astype(jnp.float32)

    if nk == 1:
        return pl.pallas_call(
            functools.partial(_matmul_kernel_single, act=act),
            out_shape=jax.ShapeDtypeStruct((M, N), out_dtype),
            grid=(M // bm, N // bn),
            in_specs=[
                pl.BlockSpec((bm, K), lambda i, j: (i, 0)),
                pl.BlockSpec((K, bn), lambda i, j: (0, j)),
                pl.BlockSpec((1, bn), lambda i, j: (0, j)),
            ],
            out_specs=pl.BlockSpec((bm, bn), lambda i, j: (i, j)),
            compiler_params=pltpu.CompilerParams(
                dimension_semantics=("parallel", "parallel")),
        )(x2d, w, b2)

    return pl.pallas_call(
        functools.partial(_matmul_kernel_acc, act=act),
        out_shape=jax.ShapeDtypeStruct((M, N), out_dtype),
        grid=(M // bm, N // bn, nk),
        in_specs=[
            pl.BlockSpec((bm, bk), lambda i, j, k: (i, k)),
            pl.BlockSpec((bk, bn), lambda i, j, k: (k, j)),
            pl.BlockSpec((1, bn), lambda i, j, k: (0, j)),
        ],
        out_specs=pl.BlockSpec((bm, bn), lambda i, j, k: (i, j)),
        scratch_shapes=[pltpu.VMEM((bm, bn), jnp.float32)],
        compiler_params=pltpu.CompilerParams(
            dimension_semantics=("parallel", "parallel", "arbitrary")),
    )(x2d, w, b2)


def _layernorm_kernel(*refs, eps, has_residual):
    # Residual add fused into the layernorm; math in f32, output in bf16.
    if has_residual:
        x_ref, r_ref, g_ref, b_ref, o_ref = refs
        x = x_ref[...].astype(jnp.float32) + r_ref[...].astype(jnp.float32)
    else:
        x_ref, g_ref, b_ref, o_ref = refs
        x = x_ref[...].astype(jnp.float32)
    mu = jnp.mean(x, axis=-1, keepdims=True)
    var = jnp.mean((x - mu) ** 2, axis=-1, keepdims=True)
    y = (x - mu) * jax.lax.rsqrt(var + eps)
    o_ref[...] = (y * g_ref[...] + b_ref[...]).astype(o_ref.dtype)


def pallas_layernorm(x2d, gamma, beta, residual=None, eps=1e-5,
                     out_dtype=jnp.bfloat16, *, tm=256):
    M, H = x2d.shape
    bm = _tile(M, tm, 8)
    has_res = residual is not None
    args = [x2d]
    in_specs = [pl.BlockSpec((bm, H), lambda i: (i, 0))]
    if has_res:
        args.append(residual)
        in_specs.append(pl.BlockSpec((bm, H), lambda i: (i, 0)))
    args += [gamma.reshape(1, H).astype(jnp.float32),
             beta.reshape(1, H).astype(jnp.float32)]
    in_specs += [pl.BlockSpec((1, H), lambda i: (0, 0)),
                 pl.BlockSpec((1, H), lambda i: (0, 0))]
    return pl.pallas_call(
        functools.partial(_layernorm_kernel, eps=eps, has_residual=has_res),
        out_shape=jax.ShapeDtypeStruct((M, H), out_dtype),
        grid=(M // bm,),
        in_specs=in_specs,
        out_specs=pl.BlockSpec((bm, H), lambda i: (i, 0)),
        compiler_params=pltpu.CompilerParams(dimension_semantics=("parallel",)),
    )(*args)


def _attention_kernel(qkv_ref, bias_ref, o_ref, *, heads, dh, tq, scale):
    # One grid step = (batch, query-block).  The fused (S, 3H) QKV block for the
    # batch stays resident across the query axis; heads are a small static loop.
    # Softmax scale is folded into q; each head's result is written directly
    # into its output lane slice (no concat, no heads-wide live set).
    H = heads * dh
    qi = pl.program_id(1)
    row0 = pl.multiple_of(qi * tq, 8)
    bias = bias_ref[0].astype(jnp.float32)                          # (1, S)
    for h in range(heads):                                          # static, small
        q = qkv_ref[0, pl.ds(row0, tq), h * dh:(h + 1) * dh]        # (tq, dh) bf16
        k = qkv_ref[0, :, H + h * dh:H + (h + 1) * dh]              # (S, dh) bf16
        v = qkv_ref[0, :, 2 * H + h * dh:2 * H + (h + 1) * dh]      # (S, dh) bf16
        q = (q.astype(jnp.float32) * scale).astype(jnp.bfloat16)    # scale on (tq,dh)
        s = jax.lax.dot_general(q, k, (((1,), (1,)), ((), ())),
                                preferred_element_type=jnp.float32)  # (tq, S)
        s = s + bias
        s = s - jnp.max(s, axis=-1, keepdims=True)
        p = jnp.exp(s)
        p = p * pl.reciprocal(jnp.sum(p, axis=-1, keepdims=True), approx=True)
        out_h = jnp.dot(p.astype(jnp.bfloat16), v,
                        preferred_element_type=jnp.float32)          # (tq, dh)
        o_ref[0, :, h * dh:(h + 1) * dh] = out_h.astype(o_ref.dtype)


def pallas_attention(qkv, bias, heads, dh, scale, *, tq_target=256):
    # qkv: (B, S, 3H) bf16 fused projection; bias: (B, 1, S) f32 additive key mask.
    B, S, H3 = qkv.shape
    H = heads * dh
    tq = _tile(S, tq_target, 8)
    return pl.pallas_call(
        functools.partial(_attention_kernel, heads=heads, dh=dh, tq=tq, scale=scale),
        out_shape=jax.ShapeDtypeStruct((B, S, H), jnp.bfloat16),
        grid=(B, S // tq),
        in_specs=[
            pl.BlockSpec((1, S, H3), lambda b, q: (b, 0, 0)),   # resident per batch
            pl.BlockSpec((1, 1, S), lambda b, q: (b, 0, 0)),
        ],
        out_specs=pl.BlockSpec((1, tq, H), lambda b, q: (b, q, 0)),
        compiler_params=pltpu.CompilerParams(
            dimension_semantics=("parallel", "parallel"),
            vmem_limit_bytes=48 * 1024 * 1024),
    )(qkv, bias)


def _mhs_kernel(u_ref, w_ref, vt_ref, bv_ref, o_ref):
    # Multi-head-selection pairwise scoring, blocked over Tq query rows AND Sk
    # key columns:
    #   logits[i, l, j] = V[:, l] . tanh(u_i + w_j) + bv[l]
    # pair temp is (Tq, Sk, D) bf16 (bounded by the wrapper's VMEM budget) and
    # the result is emitted directly in the lane-dense (Tq, L, Sk) layout.
    u = u_ref[0]                                                     # (Tq, D) bf16
    w = w_ref[0]                                                     # (Sk, D) bf16
    pair = jnp.tanh(u[:, None, :] + w[None, :, :])                   # (Tq, Sk, D) bf16
    tq = u.shape[0]
    vt_b = jnp.broadcast_to(vt_ref[...][None], (tq,) + vt_ref.shape)  # (Tq, L, D) bf16
    scores = jax.lax.dot_general(
        vt_b, pair,
        dimension_numbers=(((2,), (2,)), ((0,), (0,))),
        preferred_element_type=jnp.float32)                           # (Tq, L, Sk)
    o_ref[0] = (scores + bv_ref[...][None]).astype(o_ref.dtype)


def pallas_mhs_logits(u, w, vt, bv, *, sk_target=512,
                      pair_budget_bytes=8 * 1024 * 1024):
    # u, w: (B, S, H) bf16; vt: (L, H) bf16; bv: (L,) f32 -> (B, S, L, S) f32
    B, S, D = u.shape
    L = vt.shape[0]
    sk = _tile(S, sk_target, 128)
    # pick tq so the (tq, sk, D) bf16 tanh temp stays within the VMEM budget
    max_tq = max(8, pair_budget_bytes // max(1, sk * D * 2))
    tq = _tile(S, min(max_tq, 256), 8)
    return pl.pallas_call(
        _mhs_kernel,
        out_shape=jax.ShapeDtypeStruct((B, S, L, S), jnp.float32),
        grid=(B, S // tq, S // sk),
        in_specs=[
            pl.BlockSpec((1, tq, D), lambda b, t, j: (b, t, 0)),
            pl.BlockSpec((1, sk, D), lambda b, t, j: (b, j, 0)),
            pl.BlockSpec((L, D), lambda b, t, j: (0, 0)),
            pl.BlockSpec((L, 1), lambda b, t, j: (0, 0)),
        ],
        out_specs=pl.BlockSpec((1, tq, L, sk), lambda b, t, j: (b, t, 0, j)),
        compiler_params=pltpu.CompilerParams(
            dimension_semantics=("parallel", "parallel", "parallel"),
            vmem_limit_bytes=48 * 1024 * 1024),
    )(u, w, vt, bv.reshape(L, 1).astype(jnp.float32))


# -------------------------------- Model ----------------------------------------

def _w_init(key, fan_in, fan_out, dtype=jnp.bfloat16):
    # matches init_weights(): normal(0, 0.02), zero biases, LN gamma=1 / beta=0
    return (jax.random.normal(key, (fan_in, fan_out), jnp.float32) * 0.02).astype(dtype)


class EATransformerMHSPallas:
    def __init__(self, key, vocab_size, num_feature_types, labels, num_layers,
                 num_attention_heads, dim_feedforward, hidden_size, max_distance=2):
        self.labels = labels
        self.num_labels = len(labels)
        self.na_label_id = labels.index("NA")
        self.heads = num_attention_heads
        self.hidden = hidden_size
        self.dh = hidden_size // num_attention_heads
        H = hidden_size
        L = self.num_labels

        keys = iter(jax.random.split(key, 8 + 8 * num_layers))
        p = {}
        # synthetic sentence encoder parameters (token + feature embeddings + LN)
        p["tok_emb"] = _w_init(next(keys), vocab_size, H, jnp.float32)
        p["feat_emb"] = _w_init(next(keys), num_feature_types, H, jnp.float32)
        p["enc_ln_g"] = jnp.ones((H,), jnp.float32)
        p["enc_ln_b"] = jnp.zeros((H,), jnp.float32)

        # TODO(synk): EATransformerEncoder's relative-position embeddings
        # (max_distance) and entity_mask injection are external code not given in
        # the snippet; a standard post-LN multi-head self-attention encoder is
        # implemented instead.
        layers = []
        for _ in range(num_layers):
            lp = {}
            lp["w_qkv"] = _w_init(next(keys), H, 3 * H)        # fused Q|K|V projection
            lp["b_qkv"] = jnp.zeros((3 * H,), jnp.float32)
            lp["wo"] = _w_init(next(keys), H, H)
            lp["bo"] = jnp.zeros((H,), jnp.float32)
            lp["w1"] = _w_init(next(keys), H, dim_feedforward)
            lp["b1"] = jnp.zeros((dim_feedforward,), jnp.float32)
            lp["w2"] = _w_init(next(keys), dim_feedforward, H)
            lp["b2"] = jnp.zeros((H,), jnp.float32)
            lp["ln1_g"] = jnp.ones((H,), jnp.float32)
            lp["ln1_b"] = jnp.zeros((H,), jnp.float32)
            lp["ln2_g"] = jnp.ones((H,), jnp.float32)
            lp["ln2_b"] = jnp.zeros((H,), jnp.float32)
            layers.append(lp)
        p["layers"] = layers

        # MHS selection layer: score(i, p, j) = V_p . tanh(U h_i + W h_j) + b_p
        p["sel_u_w"] = _w_init(next(keys), H, H)
        p["sel_u_b"] = jnp.zeros((H,), jnp.float32)
        p["sel_w_w"] = _w_init(next(keys), H, H)
        p["sel_w_b"] = jnp.zeros((H,), jnp.float32)
        p["sel_vt"] = _w_init(next(keys), L, H)                # stored transposed (L, H)
        p["sel_v_b"] = jnp.zeros((L,), jnp.float32)
        self.params = p

    def forward(self, input_ids, features, attention_mask):
        B, S = input_ids.shape
        H = self.hidden
        p = self.params

        # synthetic sentence encoder (glue): embedding lookup + Pallas layernorm
        h = p["tok_emb"][input_ids] + p["feat_emb"][features[0]]          # f32
        h2d = pallas_layernorm(h.reshape(B * S, H), p["enc_ln_g"], p["enc_ln_b"])  # bf16

        # bert_mask_wrapper equivalent: additive key bias, -1e9 on padding positions.
        bias = ((1.0 - attention_mask.astype(jnp.float32)) * -1e9)[:, None, :]

        scale = 1.0 / float(np.sqrt(self.dh))
        for lp in p["layers"]:
            qkv = pallas_linear(h2d, lp["w_qkv"], lp["b_qkv"])       # (B*S, 3H) bf16
            attn = pallas_attention(qkv.reshape(B, S, 3 * H), bias,
                                    self.heads, self.dh, scale)      # (B, S, H) bf16
            attn = pallas_linear(attn.reshape(B * S, H), lp["wo"], lp["bo"])
            # dropout is identity in eval mode; residual fused into layernorm
            h2d = pallas_layernorm(attn, lp["ln1_g"], lp["ln1_b"], residual=h2d)

            ff = pallas_linear(h2d, lp["w1"], lp["b1"], act="relu")
            ff = pallas_linear(ff, lp["w2"], lp["b2"])
            h2d = pallas_layernorm(ff, lp["ln2_g"], lp["ln2_b"], residual=h2d)

        # MHS selection layer — emits (B, S, num_labels, S) directly (lane-dense).
        u = pallas_linear(h2d, p["sel_u_w"], p["sel_u_b"]).reshape(B, S, H)
        w = pallas_linear(h2d, p["sel_w_w"], p["sel_w_b"]).reshape(B, S, H)
        selection_logits = pallas_mhs_logits(u, w, p["sel_vt"], p["sel_v_b"])
        return selection_logits

    def masked_loss(self, selection_logits, selection_gold, mask):
        m = mask.astype(jnp.float32)
        sel_mask = (m[:, :, None] * m[:, None, :])[:, :, None, :]
        sel_mask = jnp.broadcast_to(sel_mask, selection_logits.shape)
        x, y = selection_logits, selection_gold.astype(jnp.float32)
        per = jnp.maximum(x, 0.0) - x * y + jnp.log1p(jnp.exp(-jnp.abs(x)))
        loss = jnp.sum(per * sel_mask)
        denom = jnp.sum(m)
        return jnp.where(denom != 0, loss / denom, loss)

    def inference(self, selection_logits, mask):
        probs = jax.nn.sigmoid(selection_logits)
        sel_mask = (mask[:, :, None] & mask[:, None, :])[:, :, None, :]  # (B,S,1,S)
        tags = np.asarray((probs * sel_mask.astype(probs.dtype)) > 0.5)
        result = [[] for _ in range(tags.shape[0])]
        # host-side triple extraction (returns Python lists, like the PyTorch code)
        for b, s, pi, o in zip(*np.nonzero(tags)):
            if int(pi) == self.na_label_id:
                continue
            result[int(b)].append((int(s), int(pi), int(o)))
        return result


# --------------------------------- main -----------------------------------------

if __name__ == "__main__":
    B, S, H = 2, 8, 32
    heads, num_layers, dim_ff = 2, 2, 64
    labels = ["NA", "r1", "r2", "r3", "r4"]
    vocab, nfeat = 50, 6

    key = jax.random.PRNGKey(0)
    k_model, k_ids, k_feat = jax.random.split(key, 3)

    model = EATransformerMHSPallas(k_model, vocab, nfeat, labels,
                                   num_layers, heads, dim_ff, H)

    input_ids = jax.random.randint(k_ids, (B, S), 1, vocab)
    feat_entity = jax.random.randint(k_feat, (B, S), 0, nfeat)          # features[0]
    attention_mask = jnp.ones((B, S), jnp.float32).at[1, S - 2:].set(0.0)

    selection_logits = model.forward(input_ids, (feat_entity,), attention_mask)
    jax.block_until_ready(selection_logits)
    assert selection_logits.shape == (B, S, len(labels), S)
    assert selection_logits.dtype == jnp.float32

    ent_mask = feat_entity != 0   # mask_entity=True path: mask = features[0] != 0
    _ = model.inference(selection_logits, ent_mask)

    print("KERNEL_OK")
</pallas_src>

<mosaic_0001>
module attributes {stable_mosaic.version = 11 : i64} {
  func.func @_layernorm_kernel(%arg0: i32, %arg1: memref<16x32xf32, #tpu.memory_space<vmem>>, %arg2: memref<1x32xf32, #tpu.memory_space<vmem>>, %arg3: memref<1x32xf32, #tpu.memory_space<vmem>>, %arg4: memref<16x32xbf16, #tpu.memory_space<vmem>>) attributes {dimension_semantics = [#tpu.dimension_semantics<parallel>], iteration_bounds = array<i64: 1>, scalar_prefetch = 0 : i64, scratch_operands = 0 : i64, tpu.core_type = #tpu.core_type<tc>, window_params = [{transform_indices = @transform_0, window_bounds = array<i64: 16, 32>}, {pipeline_mode = #tpu.pipeline_mode<synchronous>, transform_indices = @transform_1, window_bounds = array<i64: 1, 32>}, {pipeline_mode = #tpu.pipeline_mode<synchronous>, transform_indices = @transform_2, window_bounds = array<i64: 1, 32>}, {transform_indices = @transform_3, window_bounds = array<i64: 16, 32>}]} {
    %c0 = arith.constant 0 : index
    %c0_0 = arith.constant 0 : index
    %0 = vector.load %arg1[%c0, %c0_0] : memref<16x32xf32, #tpu.memory_space<vmem>>, vector<16x32xf32>
    %cst = arith.constant dense<0.000000e+00> : vector<16xf32>
    %1 = vector.multi_reduction <add>, %0, %cst [1] : vector<16x32xf32> to vector<16xf32>
    %2 = vector.shape_cast %1 : vector<16xf32> to vector<16x1xf32>
    %cst_1 = arith.constant 3.200000e+01 : f32
    %3 = vector.broadcast %cst_1 : f32 to vector<16x1xf32>
    %4 = arith.divf %2, %3 : vector<16x1xf32>
    %5 = vector.broadcast %4 : vector<16x1xf32> to vector<16x32xf32>
    %6 = arith.subf %0, %5 : vector<16x32xf32>
    %7 = arith.mulf %6, %6 : vector<16x32xf32>
    %cst_2 = arith.constant dense<0.000000e+00> : vector<16xf32>
    %8 = vector.multi_reduction <add>, %7, %cst_2 [1] : vector<16x32xf32> to vector<16xf32>
    %9 = vector.shape_cast %8 : vector<16xf32> to vector<16x1xf32>
    %cst_3 = arith.constant 3.200000e+01 : f32
    %10 = vector.broadcast %cst_3 : f32 to vector<16x1xf32>
    %11 = arith.divf %9, %10 : vector<16x1xf32>
    %12 = vector.broadcast %4 : vector<16x1xf32> to vector<16x32xf32>
    %13 = arith.subf %0, %12 : vector<16x32xf32>
    %cst_4 = arith.constant 9.99999974E-6 : f32
    %14 = vector.broadcast %cst_4 : f32 to vector<16x1xf32>
    %15 = arith.addf %11, %14 : vector<16x1xf32>
    %16 = math.rsqrt %15 : vector<16x1xf32>
    %17 = vector.broadcast %16 : vector<16x1xf32> to vector<16x32xf32>
    %18 = arith.mulf %13, %17 : vector<16x32xf32>
    %c0_5 = arith.constant 0 : index
    %c0_6 = arith.constant 0 : index
    %19 = vector.load %arg2[%c0_5, %c0_6] : memref<1x32xf32, #tpu.memory_space<vmem>>, vector<1x32xf32>
    %20 = vector.broadcast %19 : vector<1x32xf32> to vector<16x32xf32>
    %21 = arith.mulf %18, %20 : vector<16x32xf32>
    %c0_7 = arith.constant 0 : index
    %c0_8 = arith.constant 0 : index
    %22 = vector.load %arg3[%c0_7, %c0_8] : memref<1x32xf32, #tpu.memory_space<vmem>>, vector<1x32xf32>
    %23 = vector.broadcast %22 : vector<1x32xf32> to vector<16x32xf32>
    %24 = arith.addf %21, %23 : vector<16x32xf32>
    %25 = arith.truncf %24 : vector<16x32xf32> to vector<16x32xbf16>
    %c0_9 = arith.constant 0 : index
    %c0_10 = arith.constant 0 : index
    %26 = vector.load %arg4[%c0_9, %c0_10] : memref<16x32xbf16, #tpu.memory_space<vmem>>, vector<16x32xbf16>
    tpu.vector_store %arg4[%c0_9, %c0_10], %25 {strides = array<i32>} : memref<16x32xbf16, #tpu.memory_space<vmem>>, vector<16x32xbf16>,
    return
  }
  func.func @transform_0(%arg0: i32) -> (i32, i32) {
    %c0_i32 = arith.constant 0 : i32
    %c0_i32_0 = arith.constant 0 : i32
    return %arg0, %c0_i32 : i32, i32
  }
  func.func @transform_1(%arg0: i32) -> (i32, i32) {
    %c0_i32 = arith.constant 0 : i32
    %c0_i32_0 = arith.constant 0 : i32
    %c0_i32_1 = arith.constant 0 : i32
    return %c0_i32, %c0_i32_0 : i32, i32
  }
  func.func @transform_2(%arg0: i32) -> (i32, i32) {
    %c0_i32 = arith.constant 0 : i32
    %c0_i32_0 = arith.constant 0 : i32
    %c0_i32_1 = arith.constant 0 : i32
    return %c0_i32, %c0_i32_0 : i32, i32
  }
  func.func @transform_3(%arg0: i32) -> (i32, i32) {
    %c0_i32 = arith.constant 0 : i32
    %c0_i32_0 = arith.constant 0 : i32
    return %arg0, %c0_i32 : i32, i32
  }
}

</mosaic_0001>

<bundles_post_ra>
// kernel: tpu_custom_call.1
= control target key start
LH: loop header
LB: loop body
LE: loop exit
PB: predicated region body
PF: predicated region fallthrough
CT: control target
= control target key end

     0   :  { %8 = vsyncpa [#allocation3], 0  ;;  %s274_s0 = inlined_call_operand.hbm [shape: f32[16,32], index: 0, kind: input, shape index: {}]   ;;  %s275_s1 = inlined_call_operand.hbm [shape: f32[1,32], index: 1, kind: input, shape index: {}]   ;;  %s276_s2 = inlined_call_operand.vmem [shape: f32[1,32], index: 2, kind: input, shape index: {}]   ;;  %s277_s3 = inlined_call_operand.hbm [shape: bf16[16,32], index: 3, kind: output, shape index: {}]  }
   0x1   :  { %9 = vsyncpa [#allocation6], 0 }
   0x2   :  { %10 = vsyncpa [#allocation4], 0  ;;  %s15_s14 = sshll.u32 %s274_s0, 4  ;;  %s230_s15 = smov [#allocation2]   ;;  %s16_s14 = int_to_ptr.hbm [resolvable:$true] %s15_s14 }
   0x3   :  { %s17_s16 = sshll.u32 %s230_s15, 4  ;;  %s29_s19 = sshll.u32 %s275_s1, 4  ;;  %s18_s16 = int_to_ptr.vmem [resolvable:$true] %s17_s16  ;;  %s30_s19 = int_to_ptr.hbm [resolvable:$true] %s29_s19 }
   0x4   :  { %s231_s20 = smov 128   ;;  %s232_s21 = smov 8  }
   0x5   :  { %23 = dma.hbm_to_vmem [thread:$0]  %s16_s14, 256, %s18_s16, [#allocation3], %s231_s20, %s231_s20, %s232_s21  }
   0x6   :  { %s233_s22 = smov [#allocation5]  }
   0x7   :  { %s31_s23 = sshll.u32 %s233_s22, 4  ;;  %s32_s23 = int_to_ptr.vmem [resolvable:$true] %s31_s23 }
   0x8   :  { %34 = dma.hbm_to_vmem [thread:$0]  %s30_s19, 16, %s32_s23, [#allocation6]  }
   0x9   :  { %224 = dma.done.wait [#allocation3], 256  }
   0xa   :  { %225 = vsyncadd [#allocation3], 4294967040 }
   0xb   :  { %226 = dma.done.wait [#allocation6], 16  }
   0xc   :  { %227 = vsyncadd [#allocation6], 4294967280  ;;  %vm47_vm0 = vcmask 261120   ;;  %v45_v0 = vld [vmem:[#allocation2] sm:$0xff]  ;;  %v46_v2 = vld [vmem:[#allocation2 + $0x8] sm:$0xff]  ;;  %v234_v4 = vmov 32.0  }
   0xd   :  { %v48_v1 = vsel %vm47_vm0, %v45_v0, 0.0  ;;  %v51_v3 = vsel %vm47_vm0, %v46_v2, 0.0  ;;  %146 = vrcp.f32 %v234_v4  ;;  %v144_v35 = vld [vmem:[#allocation5] ss:$0 sm:$0xff]  ;;  %v145_v38 = vld [vmem:[%s276_s2] ss:$0 sm:$0xff] }
   0xe   :  { %49 = vadd.xlane.f32.xlu0 %v48_v1  ;;  %vm113_vm7 = vcmask 257024   ;;  %s235_s24 = smov [#allocation7]   ;;  %s122_s2 = sshll.u32 %s277_s3, 4  ;;  %s123_s2 = int_to_ptr.hbm [resolvable:$true] %s122_s2 }
   0xf   :  { %s120_s25 = sshll.u32 %s235_s24, 4  ;;  %s236_s28 = smov 64   ;;  %s121_s25 = int_to_ptr.vmem [resolvable:$true] %s120_s25 }
  0x10   :  { %s237_s29 = smov 4  }
  0x13   :  { %v147_v5 = vpop.eup %146 }
  0x14   :  { %v55_v6 = vmul.f32 32.0, %v147_v5  ;;  %vm59_vm1 = vweird.f32 %v147_v5 }
  0x16   :  { %52 = vadd.xlane.f32.xlu0 %v51_v3  ;;  %v56_v7 = vsub.f32 1.0, %v55_v6 }
  0x18   :  { %v57_v8 = vmul.f32 %v147_v5, %v56_v7 }
  0x1a   :  { %v58_v9 = vadd.f32 %v147_v5, %v57_v8 }
  0x1c   :  { %v60_v10 = vsel %vm59_vm1, %v147_v5, %v58_v9 }
  0x81   :  { %v50_v11 = vpop.xlane.xlu0 %49 }
  0x82   :  { %v61_v12 = vmul.f32 %v60_v10, %v50_v11 }
  0x84   :  { %v63_v13 = vsub.f32 %v45_v0, %v61_v12 }
  0x86   :  { %v65_v14 = vmul.f32 %v63_v13, %v63_v13 }
  0x88   :  { %v67_v15 = vsel %vm47_vm0, %v65_v14, 0.0 }
  0x89   :  { %68 = vadd.xlane.f32.xlu1 %v67_v15  ;;  %v53_v16 = vpop.xlane.xlu0 %52 }
  0x8a   :  { %v62_v17 = vmul.f32 %v60_v10, %v53_v16 }
  0x8c   :  { %v64_v18 = vsub.f32 %v46_v2, %v62_v17 }
  0x8e   :  { %v66_v19 = vmul.f32 %v64_v18, %v64_v18 }
  0x90   :  { %v70_v20 = vsel %vm47_vm0, %v66_v19, 0.0 }
  0x91   :  { %71 = vadd.xlane.f32.xlu1 %v70_v20 }
  0xfc   :  { %v69_v21 = vpop.xlane.xlu1 %68 }
  0xfd   :  { %v73_v22 = vmul.f32 %v69_v21, %v60_v10 }
  0xff   :  { %v75_v23 = vadd.f32 1e-05, %v73_v22 }
 0x101   :  { %148 = vrsqrt.f32 %v75_v23  ;;  %vm83_vm3 = vweird.f32 %v75_v23 }
 0x104   :  { %v72_v24 = vpop.xlane.xlu1 %71 }
 0x105   :  { %v74_v25 = vmul.f32 %v72_v24, %v60_v10 }
 0x107   :  { %v149_v26 = vpop.eup %148  ;;  %v76_v27 = vadd.f32 1e-05, %v74_v25 }
 0x108   :  { %v78_v28 = vmul.f32 %v149_v26, %v75_v23  ;;  %vm84_vm2 = vweird.f32 %v149_v26 }
 0x109   :  { %150 = vrsqrt.f32 %v76_v27  ;;  %vm85_vm4 = vmor %vm83_vm3, %vm84_vm2  ;;  %vm93_vm6 = vweird.f32 %v76_v27 }
 0x10a   :  { %v79_v29 = vmul.f32 %v149_v26, %v78_v28 }
 0x10c   :  { %v80_v30 = vmul.f32 0.5, %v79_v29 }
 0x10e   :  { %v81_v31 = vsub.f32 1.5, %v80_v30 }
 0x10f   :  { %v151_v32 = vpop.eup %150 }
 0x110   :  { %v82_v33 = vmul.f32 %v149_v26, %v81_v31  ;;  %v88_v34 = vmul.f32 %v151_v32, %v76_v27  ;;  %vm94_vm5 = vweird.f32 %v151_v32 }
 0x111   :  { %vm95_vm8 = vmor %vm93_vm6, %vm94_vm5 }
 0x112   :  { %v86_v36 = vsel %vm85_vm4, %v149_v26, %v82_v33  ;;  %v89_v37 = vmul.f32 %v151_v32, %v88_v34 }
 0x113   :  { %v97_v39 = vmul.f32 %v86_v36, %v63_v13 }
 0x114   :  { %v90_v40 = vmul.f32 0.5, %v89_v37 }
 0x115   :  { %v103_v41 = vmul.f32 %v144_v35, %v97_v39 }
 0x116   :  { %v91_v42 = vsub.f32 1.5, %v90_v40 }
 0x117   :  { %v109_v43 = vadd.f32 %v145_v38, %v103_v41 }
 0x118   :  { %v92_v44 = vmul.f32 %v151_v32, %v91_v42 }
 0x119   :  { %v111_v45 = vpack.c.bf16 %v109_v43, %v109_v43 }
 0x11a   :  { %v96_v46 = vsel %vm95_vm8, %v151_v32, %v92_v44 }
 0x11b   :  { %v98_v47 = vmul.f32 %v96_v46, %v64_v18  ;;  %114 = vst.msk [vmem:[#allocation7] sm:$0xf] %vm113_vm7, %v111_v45 }
 0x11d   :  { %v104_v48 = vmul.f32 %v144_v35, %v98_v47 }
 0x11f   :  { %v110_v49 = vadd.f32 %v145_v38, %v104_v48 }
 0x121   :  { %v112_v50 = vpack.c.bf16 %v110_v49, %v110_v49 }
 0x123   :  { %115 = vst.msk [vmem:[#allocation7 + $0x4] sm:$0xf] %vm113_vm7, %v112_v50 }
 0x124   :  { %128 = dma.vmem_to_hbm [thread:$0]  %s121_s25, 128, %s123_s2, [#allocation4], %s236_s28, %s236_s28, %s237_s29  }
 0x125   :  { %228 = dma.done.wait [#allocation4], 128  }
 0x126   :  { %229 = vsyncadd [#allocation4], 4294967168 }
 0x127   :  { %133 = vsyncpa [#allocation3], 1 }
 0x128   :  { %134 = vsyncpa [#allocation6], 1 }
 0x129   :  { %135 = vsyncpa [#allocation4], 1 }

</bundles_post_ra>
